<compile_context>
chip_gen: v7x
topology: tpu7x:2x2x1
jax: 0.10.0
libtpu: 0.0.40
codegen_flags: <defaults>
</compile_context>

<pallas_src>
import jax
import jax.numpy as jnp
import numpy as np
from jax import lax
from jax.experimental import pallas as pl
from jax.experimental.pallas import tpu as pltpu

K = 5
STRIDE = 2
PAD = 2


def _make_kernel(nb, c_out, l_out):
    def kernel(xe_ref, xo_ref, w_ref, b_ref, o_ref):
        # xe_ref, xo_ref : (nb, c_in, l_out + 2)  even / odd time positions (bf16)
        # w_ref          : (K, c_out, c_in)       per-tap weights (bf16)
        # b_ref          : (c_out, 1)             bias (f32)
        # o_ref          : (nb, c_out, l_out)     output, time in the lane dim
        t = l_out
        # Hoisted: one bias load + broadcast per grid step (not per batch elem).
        bias = jnp.broadcast_to(b_ref[...], (c_out, t))

        def body(b, carry):
            # out[:, t] needs x_pad[:, 2t + k]:
            #   k = 0, 2, 4 -> even[t + k//2];  k = 1, 3 -> odd[t + (k-1)//2]
            # K accumulating MXU dots (f32 acc), operands sliced straight
            # from the refs.
            acc = jnp.dot(w_ref[0], xe_ref[b, :, pl.ds(0, t)],
                          preferred_element_type=jnp.float32)          # k = 0
            acc += jnp.dot(w_ref[1], xo_ref[b, :, pl.ds(0, t)],
                           preferred_element_type=jnp.float32)         # k = 1
            acc += jnp.dot(w_ref[2], xe_ref[b, :, pl.ds(1, t)],
                           preferred_element_type=jnp.float32)         # k = 2
            acc += jnp.dot(w_ref[3], xo_ref[b, :, pl.ds(1, t)],
                           preferred_element_type=jnp.float32)         # k = 3
            acc += jnp.dot(w_ref[4], xe_ref[b, :, pl.ds(2, t)],
                           preferred_element_type=jnp.float32)         # k = 4
            o_ref[b] = (acc + bias).astype(o_ref.dtype)
            return carry

        lax.fori_loop(0, nb, body, 0)

    return kernel


def _vmem_budget_bytes():
    cap = 64 * 1024 * 1024                       # conservative fallback (v7x)
    try:
        cap = int(getattr(pltpu.get_tpu_info(), "vmem_capacity_bytes", cap))
    except Exception:
        pass
    return (cap * 3) // 4                        # headroom for compiler scratch


def _step_vmem_bytes(nb, c_in, c_out, l_half, l_out, out_itemsize):
    ins = 2 * 2 * nb * c_in * l_half * 2         # even/odd, double-buffered, bf16
    outs = 2 * nb * c_out * l_out * out_itemsize # output, double-buffered
    consts = 2 * (K * c_out * c_in * 2) + 2 * (c_out * 4)   # weight + bias
    return ins + outs + consts


def _pick_batch_block(n, c_in, c_out, l_half, l_out, out_itemsize, budget):
    # Largest batch block that divides N, keeps >= 2 grid steps (megacore /
    # both TCs on v7x get work) and fits the per-step VMEM budget.
    for nb in (8, 4, 2):
        if (n % nb == 0 and n // nb >= 2
                and _step_vmem_bytes(nb, c_in, c_out, l_half, l_out,
                                     out_itemsize) <= budget):
            return nb
    return 1


@jax.jit
def short_term_temporal_module(x, weight, bias):
    """x: (N, C, L); weight: (C_out, C_in, K); bias: (C_out,).
    Returns (N, C_out, L_out) == nn.Conv1d(C, C, 5, stride=2, padding=2)(x)."""
    N, C_in, L = x.shape
    C_out = weight.shape[0]
    L_out = (L + 2 * PAD - K) // STRIDE + 1
    L_half = L_out + 2                           # even/odd half length incl. halo
    compute_dtype = jnp.bfloat16

    # --- minimal glue (NCL preserved; fusible into the Pallas input DMAs).
    # The kernel is HBM-bound at realistic C: if upstream keeps x in bf16 and
    # downstream accepts bf16, changing the I/O dtypes is a near-linear win;
    # output dtype is kept = x.dtype to match the PyTorch module.
    right_pad = 2 * L_half - L - PAD             # >= PAD; extra zeros contribute 0
    xc = x.astype(compute_dtype)
    x_pad = jnp.pad(xc, ((0, 0), (0, 0), (PAD, right_pad)))   # (N, C, 2*L_half)
    x_even = x_pad[:, :, 0::2]                   # (N, C, L_half) positions 0,2,4,...
    x_odd = x_pad[:, :, 1::2]                    # (N, C, L_half) positions 1,3,5,...

    # per-tap weights: w_k[k, o, c] = weight[o, c, k]
    w_k = jnp.transpose(weight, (2, 0, 1)).astype(compute_dtype)   # (K, C_out, C_in)
    b2 = bias.astype(jnp.float32).reshape(C_out, 1)

    osz = x.dtype.itemsize
    budget = _vmem_budget_bytes()
    NB = _pick_batch_block(N, C_in, C_out, L_half, L_out, osz, budget)
    grid = (N // NB,)
    vmem_limit = int(min(
        budget,
        max(4 * _step_vmem_bytes(NB, C_in, C_out, L_half, L_out, osz),
            16 * 1024 * 1024)))

    kernel = _make_kernel(NB, C_out, L_out)

    # TODO(synk): for very long sequences (per-step block above the VMEM
    # budget even at NB=1) add an L_out tile axis with a 2-sample halo per
    # parity half instead of staging the full time extent per grid step.
    # TODO(synk): weight/bias are DMA'd only once (constant index_map) but
    # still get a second VMEM buffer; pin them with pipeline_mode=pl.Buffered(1)
    # once that path is validated on the deployment jax release.
    out = pl.pallas_call(
        kernel,
        out_shape=jax.ShapeDtypeStruct((N, C_out, L_out), x.dtype),
        grid=grid,
        in_specs=[
            pl.BlockSpec((NB, C_in, L_half), lambda n: (n, 0, 0)),
            pl.BlockSpec((NB, C_in, L_half), lambda n: (n, 0, 0)),
            pl.BlockSpec((K, C_out, C_in), lambda n: (0, 0, 0)),
            pl.BlockSpec((C_out, 1), lambda n: (0, 0)),
        ],
        out_specs=pl.BlockSpec((NB, C_out, L_out), lambda n: (n, 0, 0)),
        compiler_params=pltpu.CompilerParams(
            dimension_semantics=("parallel",),
            allow_input_fusion=[True, True, False, False],
            vmem_limit_bytes=vmem_limit,
        ),
    )(x_even, x_odd, w_k, b2)

    return out


def _reference(x, weight, bias):
    out = lax.conv_general_dilated(
        x, weight,
        window_strides=(STRIDE,),
        padding=((PAD, PAD),),
        dimension_numbers=("NCH", "OIH", "NCH"),
    )
    return out + bias[None, :, None]


if __name__ == "__main__":
    key = jax.random.PRNGKey(0)
    kx, kw, kb = jax.random.split(key, 3)

    N, C, L = 2, 16, 16                                  # small test shapes
    x = jax.random.normal(kx, (N, C, L), dtype=jnp.float32)
    weight = jax.random.normal(kw, (C, C, K), dtype=jnp.float32) * 0.1
    bias = jax.random.normal(kb, (C,), dtype=jnp.float32) * 0.1

    out = jax.block_until_ready(short_term_temporal_module(x, weight, bias))
    ref = jax.block_until_ready(_reference(x, weight, bias))

    assert out.shape == ref.shape, (out.shape, ref.shape)
    # bf16 activations/weights inside the kernel (f32 accumulation) -> loose tol
    np.testing.assert_allclose(np.asarray(out), np.asarray(ref),
                               rtol=5e-2, atol=5e-2)
    print("KERNEL_OK")
</pallas_src>

<mosaic_0001>
module attributes {stable_mosaic.version = 11 : i64} {
  func.func @kernel(%arg0: i32, %arg1: memref<1x16x10xbf16, #tpu.memory_space<vmem>>, %arg2: memref<1x16x10xbf16, #tpu.memory_space<vmem>>, %arg3: memref<5x16x16xbf16, #tpu.memory_space<vmem>>, %arg4: memref<16x1xf32, #tpu.memory_space<vmem>>, %arg5: memref<1x16x8xf32, #tpu.memory_space<vmem>>) attributes {dimension_semantics = [#tpu.dimension_semantics<parallel>], iteration_bounds = array<i64: 2>, scalar_prefetch = 0 : i64, scratch_operands = 0 : i64, tpu.core_type = #tpu.core_type<tc>, window_params = [{transform_indices = @transform_0, window_bounds = array<i64: 1, 16, 10>}, {transform_indices = @transform_1, window_bounds = array<i64: 1, 16, 10>}, {pipeline_mode = #tpu.pipeline_mode<synchronous>, transform_indices = @transform_2, window_bounds = array<i64: 5, 16, 16>}, {pipeline_mode = #tpu.pipeline_mode<synchronous>, transform_indices = @transform_3, window_bounds = array<i64: 16, 1>}, {transform_indices = @transform_4, window_bounds = array<i64: 1, 16, 8>}]} {
    %c0 = arith.constant 0 : index
    %c0_0 = arith.constant 0 : index
    %0 = vector.load %arg4[%c0, %c0_0] : memref<16x1xf32, #tpu.memory_space<vmem>>, vector<16x1xf32>
    %1 = vector.shape_cast %0 : vector<16x1xf32> to vector<16x1xf32>
    %2 = vector.broadcast %1 : vector<16x1xf32> to vector<16x8xf32>
    %c0_i32 = arith.constant 0 : i32
    %c0_1 = arith.constant 0 : index
    %c0_2 = arith.constant 0 : index
    %c0_3 = arith.constant 0 : index
    %3 = vector.load %arg3[%c0_1, %c0_2, %c0_3] : memref<5x16x16xbf16, #tpu.memory_space<vmem>>, vector<1x16x16xbf16>
    %4 = vector.shape_cast %3 : vector<1x16x16xbf16> to vector<16x16xbf16>
    %5 = arith.index_cast %c0_i32 : i32 to index
    %c0_4 = arith.constant 0 : index
    %c0_5 = arith.constant 0 : index
    %6 = vector.load %arg1[%5, %c0_4, %c0_5] : memref<1x16x10xbf16, #tpu.memory_space<vmem>>, vector<1x16x8xbf16>
    %7 = vector.shape_cast %6 : vector<1x16x8xbf16> to vector<16x8xbf16>
    %cst = arith.constant dense<0.000000e+00> : vector<16x8xf32>
    %8 = tpu.matmul %4, %7, %cst {dimension_numbers = #tpu.dot_dimension_numbers<[1], [0], [0], [1], [0, 0, 1, 1], [], []>} : vector<16x16xbf16>, vector<16x8xbf16>, vector<16x8xf32> -> vector<16x8xf32>
    %c1 = arith.constant 1 : index
    %c0_6 = arith.constant 0 : index
    %c0_7 = arith.constant 0 : index
    %9 = vector.load %arg3[%c1, %c0_6, %c0_7] : memref<5x16x16xbf16, #tpu.memory_space<vmem>>, vector<1x16x16xbf16>
    %10 = vector.shape_cast %9 : vector<1x16x16xbf16> to vector<16x16xbf16>
    %11 = arith.index_cast %c0_i32 : i32 to index
    %c0_8 = arith.constant 0 : index
    %c0_9 = arith.constant 0 : index
    %12 = vector.load %arg2[%11, %c0_8, %c0_9] : memref<1x16x10xbf16, #tpu.memory_space<vmem>>, vector<1x16x8xbf16>
    %13 = vector.shape_cast %12 : vector<1x16x8xbf16> to vector<16x8xbf16>
    %cst_10 = arith.constant dense<0.000000e+00> : vector<16x8xf32>
    %14 = tpu.matmul %10, %13, %cst_10 {dimension_numbers = #tpu.dot_dimension_numbers<[1], [0], [0], [1], [0, 0, 1, 1], [], []>} : vector<16x16xbf16>, vector<16x8xbf16>, vector<16x8xf32> -> vector<16x8xf32>
    %15 = arith.addf %8, %14 : vector<16x8xf32>
    %c2 = arith.constant 2 : index
    %c0_11 = arith.constant 0 : index
    %c0_12 = arith.constant 0 : index
    %16 = vector.load %arg3[%c2, %c0_11, %c0_12] : memref<5x16x16xbf16, #tpu.memory_space<vmem>>, vector<1x16x16xbf16>
    %17 = vector.shape_cast %16 : vector<1x16x16xbf16> to vector<16x16xbf16>
    %18 = arith.index_cast %c0_i32 : i32 to index
    %c0_13 = arith.constant 0 : index
    %c1_14 = arith.constant 1 : index
    %19 = vector.load %arg1[%18, %c0_13, %c1_14] : memref<1x16x10xbf16, #tpu.memory_space<vmem>>, vector<1x16x8xbf16>
    %20 = vector.shape_cast %19 : vector<1x16x8xbf16> to vector<16x8xbf16>
    %cst_15 = arith.constant dense<0.000000e+00> : vector<16x8xf32>
    %21 = tpu.matmul %17, %20, %cst_15 {dimension_numbers = #tpu.dot_dimension_numbers<[1], [0], [0], [1], [0, 0, 1, 1], [], []>} : vector<16x16xbf16>, vector<16x8xbf16>, vector<16x8xf32> -> vector<16x8xf32>
    %22 = arith.addf %15, %21 : vector<16x8xf32>
    %c3 = arith.constant 3 : index
    %c0_16 = arith.constant 0 : index
    %c0_17 = arith.constant 0 : index
    %23 = vector.load %arg3[%c3, %c0_16, %c0_17] : memref<5x16x16xbf16, #tpu.memory_space<vmem>>, vector<1x16x16xbf16>
    %24 = vector.shape_cast %23 : vector<1x16x16xbf16> to vector<16x16xbf16>
    %25 = arith.index_cast %c0_i32 : i32 to index
    %c0_18 = arith.constant 0 : index
    %c1_19 = arith.constant 1 : index
    %26 = vector.load %arg2[%25, %c0_18, %c1_19] : memref<1x16x10xbf16, #tpu.memory_space<vmem>>, vector<1x16x8xbf16>
    %27 = vector.shape_cast %26 : vector<1x16x8xbf16> to vector<16x8xbf16>
    %cst_20 = arith.constant dense<0.000000e+00> : vector<16x8xf32>
    %28 = tpu.matmul %24, %27, %cst_20 {dimension_numbers = #tpu.dot_dimension_numbers<[1], [0], [0], [1], [0, 0, 1, 1], [], []>} : vector<16x16xbf16>, vector<16x8xbf16>, vector<16x8xf32> -> vector<16x8xf32>
    %29 = arith.addf %22, %28 : vector<16x8xf32>
    %c4 = arith.constant 4 : index
    %c0_21 = arith.constant 0 : index
    %c0_22 = arith.constant 0 : index
    %30 = vector.load %arg3[%c4, %c0_21, %c0_22] : memref<5x16x16xbf16, #tpu.memory_space<vmem>>, vector<1x16x16xbf16>
    %31 = vector.shape_cast %30 : vector<1x16x16xbf16> to vector<16x16xbf16>
    %32 = arith.index_cast %c0_i32 : i32 to index
    %c0_23 = arith.constant 0 : index
    %c2_24 = arith.constant 2 : index
    %33 = vector.load %arg1[%32, %c0_23, %c2_24] : memref<1x16x10xbf16, #tpu.memory_space<vmem>>, vector<1x16x8xbf16>
    %34 = vector.shape_cast %33 : vector<1x16x8xbf16> to vector<16x8xbf16>
    %cst_25 = arith.constant dense<0.000000e+00> : vector<16x8xf32>
    %35 = tpu.matmul %31, %34, %cst_25 {dimension_numbers = #tpu.dot_dimension_numbers<[1], [0], [0], [1], [0, 0, 1, 1], [], []>} : vector<16x16xbf16>, vector<16x8xbf16>, vector<16x8xf32> -> vector<16x8xf32>
    %36 = arith.addf %29, %35 : vector<16x8xf32>
    %37 = arith.addf %36, %2 : vector<16x8xf32>
    %38 = arith.index_cast %c0_i32 : i32 to index
    %c0_26 = arith.constant 0 : index
    %c0_27 = arith.constant 0 : index
    %39 = vector.load %arg5[%38, %c0_26, %c0_27] : memref<1x16x8xf32, #tpu.memory_space<vmem>>, vector<1x16x8xf32>
    %40 = vector.shape_cast %39 : vector<1x16x8xf32> to vector<16x8xf32>
    %41 = vector.shape_cast %37 : vector<16x8xf32> to vector<1x16x8xf32>
    tpu.vector_store %arg5[%38, %c0_26, %c0_27], %41 {strides = array<i32>} : memref<1x16x8xf32, #tpu.memory_space<vmem>>, vector<1x16x8xf32>,
    %c1_i32 = arith.constant 1 : i32
    return
  }
  func.func @transform_0(%arg0: i32) -> (i32, i32, i32) {
    %c0_i32 = arith.constant 0 : i32
    %c0_i32_0 = arith.constant 0 : i32
    %c0_i32_1 = arith.constant 0 : i32
    return %arg0, %c0_i32, %c0_i32_0 : i32, i32, i32
  }
  func.func @transform_1(%arg0: i32) -> (i32, i32, i32) {
    %c0_i32 = arith.constant 0 : i32
    %c0_i32_0 = arith.constant 0 : i32
    %c0_i32_1 = arith.constant 0 : i32
    return %arg0, %c0_i32, %c0_i32_0 : i32, i32, i32
  }
  func.func @transform_2(%arg0: i32) -> (i32, i32, i32) {
    %c0_i32 = arith.constant 0 : i32
    %c0_i32_0 = arith.constant 0 : i32
    %c0_i32_1 = arith.constant 0 : i32
    %c0_i32_2 = arith.constant 0 : i32
    return %c0_i32, %c0_i32_0, %c0_i32_1 : i32, i32, i32
  }
  func.func @transform_3(%arg0: i32) -> (i32, i32) {
    %c0_i32 = arith.constant 0 : i32
    %c0_i32_0 = arith.constant 0 : i32
    %c0_i32_1 = arith.constant 0 : i32
    return %c0_i32, %c0_i32_0 : i32, i32
  }
  func.func @transform_4(%arg0: i32) -> (i32, i32, i32) {
    %c0_i32 = arith.constant 0 : i32
    %c0_i32_0 = arith.constant 0 : i32
    %c0_i32_1 = arith.constant 0 : i32
    return %arg0, %c0_i32, %c0_i32_0 : i32, i32, i32
  }
}

</mosaic_0001>

<bundles_post_ra>
// kernel: short_term_temporal_module.1
= control target key start
LH: loop header
LB: loop body
LE: loop exit
PB: predicated region body
PF: predicated region fallthrough
CT: control target
= control target key end

     0   :  { %s730_s15 = smov 0   ;;  %s785_s0 = inlined_call_operand.vmem [shape: bf16[2,16,10], index: 0, kind: input, shape index: {}]   ;;  %s786_s1 = inlined_call_operand.vmem [shape: bf16[2,16,10], index: 1, kind: input, shape index: {}]   ;;  %s787_s2 = inlined_call_operand.vmem [shape: bf16[5,16,16], index: 2, kind: input, shape index: {}]   ;;  %s788_s3 = inlined_call_operand.vmem [shape: f32[16,1], index: 3, kind: input, shape index: {}]   ;;  %s789_s4 = inlined_call_operand.vmem [shape: f32[2,16,8], index: 4, kind: output, shape index: {}]  }
   0x1 LB: > { %s594_s16 = sadd.s32 4294967295, %s698_s15   ;;  %p598_p0 = scmp.ge.s32.totalorder %s698_s15, 1  ;;  %s698_s15 = sphi %s730_s15, %s14_s15  }
   0x2   : > { %p172_p1 = scmp.lt.s32.totalorder %s698_s15, 3 }
   0x4   : > { %p173_p2 = pnand %p598_p0, %p172_p1 }
   0x5   : > { %p203_p3 = scmp.lt.s32.totalorder (!%p173_p2), %s594_s16, 1  ;;  %v700_v0 = vmov (!%p173_p2), 0.0   ;;  %vm701_vm0 = vmmov (!%p173_p2), 0   ;;  %v702_v3 = vmov (!%p173_p2), 0   ;;  %s703_s24 = smov (!%p173_p2), 127   ;;  %v687_v4 = vld [vmem:[%s787_s2 + $0x8] sm:$0xff] (!%p173_p2)  }
   0x6   : > { %176 = sbr.rel (%p173_p2) target bundleno = 362 (0x16a), region = 36  ;;  %640 = vmatprep.subr.bf16.mxu0 (!%p173_p2), %v700_v0  ;;  %642 = vmatprep.mubr.msk.bf16.mxu0 (!%p173_p2), %vm701_vm0, %v700_v0  ;;  %s704_s25 = smov (!%p173_p2), 126   ;;  %vm251_vm1 = vcmask (!%p173_p2), 130048   ;;  %v688_v5 = vld [vmem:[%s787_s2] sm:$0xff] (!%p173_p2)   ;;  %v220_v7 = vld [vmem:[%s788_s3 + $0x8] sm:$0xff] (!%p173_p2)  ;;  %v689_v9 = vld [vmem:[%s787_s2 + $0x10] sm:$0xff] (!%p173_p2)  }
   0x7   : > { %646 = vmatprep.subr.bf16.mxu1 (!%p173_p2), %v700_v0  ;;  %648 = vmatprep.mubr.msk.bf16.mxu1 (!%p173_p2), %vm701_vm0, %v700_v0  ;;  %v219_v6 = vld [vmem:[%s788_s3] sm:$0xff] (!%p173_p2)  ;;  %v690_v12 = vld [vmem:[%s787_s2 + $0x18] sm:$0xff] (!%p173_p2)   ;;  %vm524_vm2 = vcmask (!%p173_p2), 64512  }
   0x8   : > { %683 = vset.pattern.permute.xlu1 (!%p173_p2), %v702_v3  ;;  %684 = vset.pattern.permute.xlu0 (!%p173_p2), %v702_v3  ;;  %v691_v13 = vld [vmem:[%s787_s2 + $0x20] sm:$0xff] (!%p173_p2)  }
   0xd   : > { %s791_s16 = smov (!%p203_p3, %s594_s16), 1 }
   0xe   : > { %s627_s17 = sshll.u32 %s791_s16, 3  ;;  %s629_s14 = sshll.u32 %s791_s16, 4 }
   0xf   : > { %s207_s20 = scalar_lea.vmem %s785_s0, %s627_s17  ;;  %s212_s23 = scalar_lea.vmem %s786_s1, %s627_s17 }
  0x10   : > { %v685_v1 = vld [vmem:[%s207_s20] sm:$0xff]   ;;  %s217_s19 = scalar_lea.vmem %s789_s4, %s629_s14 }
  0x11   : > { %v686_v2 = vld [vmem:[%s212_s23] sm:$0xff]   ;;  %359 = vrot.lane.b32.xlu0 %v685_v1, %s703_s24  ;;  %473 = vrot.lane.b32.xlu1 %v685_v1, %s704_s25 }
  0x12   : > { %641 = vmatpush3.bf16.msra.mxu0 %v686_v2  ;;  %647 = vmatpush3.bf16.msra.mxu1 %v685_v1 }
  0x13   : > { %652 = vmatprep.subr.bf16.mxu0 %v700_v0  ;;  %658 = vmatprep.subr.bf16.mxu1 %v700_v0 }
  0x15   : > { %416 = vrot.lane.b32.xlu0 %v686_v2, %s703_s24  ;;  %643 = vmatmul.mubr.msk.bf16.vlgmr.msra.gmra.mrb[0].mxu0 %vm251_vm1, %v687_v4 }
  0x16   : > { %649 = vmatmul.mubr.msk.bf16.vlgmr.msra.gmra.mrb[0].mxu1 %vm251_vm1, %v688_v5  ;;  %654 = vmatprep.mubr.msk.bf16.mxu0 %vm701_vm0, %v700_v0 }
  0x17   : > { %660 = vmatprep.mubr.msk.bf16.mxu1 %vm701_vm0, %v700_v0  ;;  %223 = vperm.xlu1 %683, %v219_v6  }
  0x19   : > { %228 = vperm.xlu0 %684, %v220_v7  }
  0x83   : > { %v360_v8 = vpop.permute.xlu0 %359  ;;  %v474_v10 = vpop.permute.xlu1 %473 }
  0x84   : > { %653 = vmatpush3.bf16.msra.mxu0 %v360_v8 }
  0x85   : > { %664 = vmatprep.subr.bf16.mxu0 %v700_v0 }
  0x87   : > { %655 = vmatmul.mubr.msk.bf16.vlgmr.msra.gmra.mrb[4].mxu0 %vm251_vm1, %v689_v9  ;;  %v417_v11 = vpop.permute.xlu0 %416 }
  0x88   : > { %659 = vmatpush3.bf16.msra.mxu1 %v417_v11  ;;  %665 = vmatpush3.bf16.msra.mxu0 %v474_v10 }
  0x89   : > { %666 = vmatprep.mubr.msk.bf16.mxu0 %vm701_vm0, %v700_v0 }
  0x8b   : > { %661 = vmatmul.mubr.msk.bf16.vlgmr.msra.gmra.mrb[4].mxu1 %vm251_vm1, %v690_v12 }
  0x8f   : > { %667 = vmatmul.mubr.msk.bf16.vlgmr.msra.gmra.mrb[8].mxu0 %vm251_vm1, %v691_v13 }
  0x96   : > { %v224_v37 = vpop.permute.xlu1 %223 }
  0x98   : > { %v229_v41 = vpop.permute.xlu0 %228 }
  0xe8   : > { %v289_v14 = vpop.f32.mrb[0].mxu0 }
  0xe9   : > { %v644_v15 = vpop.f32.mrb[1].mxu0  ;;  %v344_v16 = vpop.f32.mrb[0].mxu1 }
  0xea   : > { %v345_v17 = vadd.f32 %v344_v16, %v289_v14  ;;  %v292_v18 = vpop.f32.mrb[2].mxu0  ;;  %v650_v19 = vpop.f32.mrb[1].mxu1 }
  0xeb   : > { %v645_v20 = vpop.f32.mrb[3].mxu0  ;;  %v347_v21 = vpop.f32.mrb[2].mxu1 }
  0xec   : > { %v348_v22 = vadd.f32 %v347_v21, %v292_v18  ;;  %v651_v23 = vpop.f32.mrb[3].mxu1 }
 0x15a   : > { %v399_v24 = vpop.f32.mrb[4].mxu0 }
 0x15b   : > { %v406_v25 = vadd.f32 %v399_v24, %v345_v17  ;;  %v656_v26 = vpop.f32.mrb[5].mxu0 }
 0x15c   : > { %v402_v27 = vpop.f32.mrb[6].mxu0 }
 0x15d   : > { %v407_v28 = vadd.f32 %v402_v27, %v348_v22  ;;  %v657_v29 = vpop.f32.mrb[7].mxu0 }
 0x15e   : > { %v456_v30 = vpop.f32.mrb[4].mxu1 }
 0x15f   : > { %v463_v31 = vadd.f32 %v456_v30, %v406_v25  ;;  %v662_v32 = vpop.f32.mrb[5].mxu1 }
 0x160   : > { %v459_v33 = vpop.f32.mrb[6].mxu1 }
 0x161   : > { %v464_v34 = vadd.f32 %v459_v33, %v407_v28  ;;  %v663_v35 = vpop.f32.mrb[7].mxu1 }
 0x162   : > { %v513_v36 = vpop.f32.mrb[8].mxu0 }
 0x163   : > { %v520_v38 = vadd.f32 %v513_v36, %v463_v31  ;;  %v668_v39 = vpop.f32.mrb[9].mxu0 }
 0x164   : > { %v516_v40 = vpop.f32.mrb[10].mxu0 }
 0x165   : > { %v522_v42 = vadd.f32 %v520_v38, %v224_v37  ;;  %v521_v43 = vadd.f32 %v516_v40, %v464_v34  ;;  %v669_v44 = vpop.f32.mrb[11].mxu0 }
 0x167   : > { %525 = vst.msk [vmem:[%s217_s19] sm:$0xff] %vm524_vm2, %v522_v42  ;;  %v523_v45 = vadd.f32 %v521_v43, %v229_v41 }
 0x169   : > { %526 = vst.msk [vmem:[%s217_s19 + $0x8] sm:$0xff] %vm524_vm2, %v523_v45 }
 0x16a PF: > { %s14_s15 = sadd.s32 1, %s698_s15  }
 0x16b   : > { %p11_p4 = scmp.ge.s32.totalorder %s14_s15, 4  }
 0x16d   :  { %13 = sbr.rel (!%p11_p4) target bundleno = 1 (0x1), region = 73 }

</bundles_post_ra>
